<compile_context>
chip_gen: v7x
topology: tpu7x:2x2x1
jax: 0.10.0
libtpu: 0.0.40
codegen_flags: <defaults>
</compile_context>

<pallas_src>
import jax
import jax.numpy as jnp
from jax.experimental import pallas as pl
from jax.experimental.pallas import tpu as pltpu


def _matmul_bias_kernel(p_ref, w_ref, b_ref, o_ref):
    # p_ref: (tm, K)  bf16 im2col patches
    # w_ref: (K, tn)  bf16 folded conv weights (tap-major, then C_in)
    # b_ref: (1, tn)  f32 folded bias
    # o_ref: (tm, tn) f32 lane-dense output slab
    acc = jnp.dot(p_ref[...], w_ref[...], preferred_element_type=jnp.float32)
    o_ref[...] = acc + b_ref[...]


def _choose_m_tile(M, cap=512):
    """Pick the M-tile: sublane-aligned, capped, and (when possible) giving
    at least 2 grid steps so v7x's two TensorCores both get work."""
    if M <= 8:
        return M                      # full-dim block (allowed even if < 8)
    tm = min(cap, -(-M // 2))         # aim for >= 2 grid steps
    tm = -(-tm // 8) * 8              # multiple of 8 (sublane dim)
    return min(tm, cap)


def downsample(x_nchw, w_oihw, bias):
    """Conv2d(C_in->C_out, k=3, stride=2, pad=1) + folded BatchNorm (eval).

    x_nchw: (B, C_in, H, W);  w_oihw: (C_out, C_in, 3, 3);  bias: (C_out,)
    returns (B, C_out, H_out, W_out) f32 with H_out = (H-1)//2 + 1.
    """
    B, C_in, H, W = x_nchw.shape
    C_out = w_oihw.shape[0]
    assert w_oihw.shape == (C_out, C_in, 3, 3)

    H_out = (H - 1) // 2 + 1
    W_out = (W - 1) // 2 + 1
    M = B * H_out * W_out
    K = 9 * C_in

    # ---- wrapper-side layout plumbing (zero FLOPs) ----
    x_nhwc = jnp.transpose(x_nchw, (0, 2, 3, 1))
    x_pad = jnp.pad(x_nhwc, ((0, 0), (1, 1), (1, 1), (0, 0)))
    # im2col of the padded input: tap-major along the channel axis.
    taps = [x_pad[:, dy:dy + 2 * H_out:2, dx:dx + 2 * W_out:2, :]
            for dy in range(3) for dx in range(3)]
    patches = jnp.concatenate(taps, axis=-1)            # (B, H_out, W_out, 9*C_in)
    patches = patches.reshape(M, K).astype(jnp.bfloat16)

    # weights: (C_out, C_in, 3, 3) -> (3, 3, C_in, C_out) -> (9*C_in, C_out)
    w2 = jnp.transpose(w_oihw, (2, 3, 1, 0)).reshape(K, C_out)
    w2 = w2.astype(jnp.bfloat16)
    b2 = bias.reshape(1, C_out).astype(jnp.float32)

    # ---- tiling ----
    tm = _choose_m_tile(M)
    M_pad = -(-M // tm) * tm
    if M_pad != M:
        patches = jnp.pad(patches, ((0, M_pad - M), (0, 0)))
    grid_m = M_pad // tm

    # Tile C_out only when it is a large multiple of 128 (keeps the resident
    # weight block bounded on v7x); otherwise use the full (lane) extent.
    tn = 128 if (C_out > 128 and C_out % 128 == 0) else C_out
    grid_n = C_out // tn

    out2d = pl.pallas_call(
        _matmul_bias_kernel,
        out_shape=jax.ShapeDtypeStruct((M_pad, C_out), jnp.float32),
        grid=(grid_m, grid_n),
        in_specs=[
            pl.BlockSpec((tm, K), lambda i, j: (i, 0)),
            pl.BlockSpec((K, tn), lambda i, j: (0, j)),
            pl.BlockSpec((1, tn), lambda i, j: (0, j)),
        ],
        out_specs=pl.BlockSpec((tm, tn), lambda i, j: (i, j)),
        compiler_params=pltpu.CompilerParams(
            dimension_semantics=("parallel", "parallel")),
    )(patches, w2, b2)

    out = out2d[:M].reshape(B, H_out, W_out, C_out)
    return jnp.transpose(out, (0, 3, 1, 2))


def fold_conv_bn(w_oihw, b, gamma, beta, running_mean, running_var, eps=1e-5):
    """Fold an eval-mode BatchNorm2d into the preceding conv."""
    scale = gamma / jnp.sqrt(running_var + eps)
    w_f = w_oihw * scale[:, None, None, None]
    b_f = (b - running_mean) * scale + beta
    return w_f, b_f


if __name__ == "__main__":
    key = jax.random.PRNGKey(0)
    ks = jax.random.split(key, 8)

    B, C_in, C_out, H, W = 2, 4, 8, 16, 16
    x = jax.random.normal(ks[0], (B, C_in, H, W), jnp.float32)

    # Synthetic Conv2d + BatchNorm2d (eval mode) parameters.
    w = 0.2 * jax.random.normal(ks[1], (C_out, C_in, 3, 3), jnp.float32)
    b = 0.1 * jax.random.normal(ks[2], (C_out,), jnp.float32)
    gamma = 1.0 + 0.1 * jax.random.normal(ks[3], (C_out,), jnp.float32)
    beta = 0.1 * jax.random.normal(ks[4], (C_out,), jnp.float32)
    r_mean = 0.1 * jax.random.normal(ks[5], (C_out,), jnp.float32)
    r_var = jnp.exp(0.2 * jax.random.normal(ks[6], (C_out,), jnp.float32))
    w_f, b_f = fold_conv_bn(w, b, gamma, beta, r_mean, r_var)

    out = downsample(x, w_f, b_f)
    out = jax.block_until_ready(out)

    # Pure-JAX reference (same folded-BN math) for a sanity check.
    ref = jax.lax.conv_general_dilated(
        x, w_f, window_strides=(2, 2), padding=((1, 1), (1, 1)),
        dimension_numbers=("NCHW", "OIHW", "NCHW"))
    ref = ref + b_f[None, :, None, None]

    H_out, W_out = (H - 1) // 2 + 1, (W - 1) // 2 + 1
    assert out.shape == (B, C_out, H_out, W_out)
    assert out.dtype == jnp.float32
    assert bool(jnp.all(jnp.isfinite(out)))
    # bf16 MXU inputs + f32 accumulation: ~bf16-accurate, same as default
    # precision for f32 conv on TPU.
    err = float(jnp.max(jnp.abs(out - ref)))
    assert err < 5e-2, f"max abs err {err}"

    print("KERNEL_OK")
</pallas_src>

<mosaic_0001>
module attributes {stable_mosaic.version = 11 : i64} {
  func.func @_matmul_bias_kernel(%arg0: i32, %arg1: i32, %arg2: memref<64x36xbf16, #tpu.memory_space<vmem>>, %arg3: memref<36x8xbf16, #tpu.memory_space<vmem>>, %arg4: memref<1x8xf32, #tpu.memory_space<vmem>>, %arg5: memref<64x8xf32, #tpu.memory_space<vmem>>) attributes {dimension_semantics = [#tpu.dimension_semantics<parallel>, #tpu.dimension_semantics<parallel>], iteration_bounds = array<i64: 2, 1>, scalar_prefetch = 0 : i64, scratch_operands = 0 : i64, tpu.core_type = #tpu.core_type<tc>, window_params = [{transform_indices = @transform_0, window_bounds = array<i64: 64, 36>}, {transform_indices = @transform_1, window_bounds = array<i64: 36, 8>}, {transform_indices = @transform_2, window_bounds = array<i64: 1, 8>}, {transform_indices = @transform_3, window_bounds = array<i64: 64, 8>}]} {
    %c0 = arith.constant 0 : index
    %c0_0 = arith.constant 0 : index
    %0 = vector.load %arg2[%c0, %c0_0] : memref<64x36xbf16, #tpu.memory_space<vmem>>, vector<64x36xbf16>
    %c0_1 = arith.constant 0 : index
    %c0_2 = arith.constant 0 : index
    %1 = vector.load %arg3[%c0_1, %c0_2] : memref<36x8xbf16, #tpu.memory_space<vmem>>, vector<36x8xbf16>
    %cst = arith.constant dense<0.000000e+00> : vector<64x8xf32>
    %2 = tpu.matmul %0, %1, %cst {dimension_numbers = #tpu.dot_dimension_numbers<[1], [0], [0], [1], [0, 0, 1, 1], [], []>} : vector<64x36xbf16>, vector<36x8xbf16>, vector<64x8xf32> -> vector<64x8xf32>
    %c0_3 = arith.constant 0 : index
    %c0_4 = arith.constant 0 : index
    %3 = vector.load %arg4[%c0_3, %c0_4] : memref<1x8xf32, #tpu.memory_space<vmem>>, vector<1x8xf32>
    %4 = vector.broadcast %3 : vector<1x8xf32> to vector<64x8xf32>
    %5 = arith.addf %2, %4 : vector<64x8xf32>
    %c0_5 = arith.constant 0 : index
    %c0_6 = arith.constant 0 : index
    %6 = vector.load %arg5[%c0_5, %c0_6] : memref<64x8xf32, #tpu.memory_space<vmem>>, vector<64x8xf32>
    tpu.vector_store %arg5[%c0_5, %c0_6], %5 {strides = array<i32>} : memref<64x8xf32, #tpu.memory_space<vmem>>, vector<64x8xf32>,
    return
  }
  func.func @transform_0(%arg0: i32, %arg1: i32) -> (i32, i32) {
    %c0_i32 = arith.constant 0 : i32
    %c0_i32_0 = arith.constant 0 : i32
    return %arg0, %c0_i32 : i32, i32
  }
  func.func @transform_1(%arg0: i32, %arg1: i32) -> (i32, i32) {
    %c0_i32 = arith.constant 0 : i32
    %c0_i32_0 = arith.constant 0 : i32
    return %c0_i32, %arg1 : i32, i32
  }
  func.func @transform_2(%arg0: i32, %arg1: i32) -> (i32, i32) {
    %c0_i32 = arith.constant 0 : i32
    %c0_i32_0 = arith.constant 0 : i32
    return %c0_i32, %arg1 : i32, i32
  }
  func.func @transform_3(%arg0: i32, %arg1: i32) -> (i32, i32) {
    %c0_i32 = arith.constant 0 : i32
    return %arg0, %arg1 : i32, i32
  }
}

</mosaic_0001>

<bundles_post_ra>
// kernel: tpu_custom_call.1
= control target key start
LH: loop header
LB: loop body
LE: loop exit
PB: predicated region body
PF: predicated region fallthrough
CT: control target
= control target key end

     0   :  { %s603_s12 = smov 0   ;;  %s605_s13 = smov 0   ;;  %s656_s0 = inlined_call_operand.vmem [shape: bf16[128,36], index: 0, kind: input, shape index: {}]   ;;  %s657_s1 = inlined_call_operand.vmem [shape: bf16[36,8], index: 1, kind: input, shape index: {}]   ;;  %s658_s2 = inlined_call_operand.vmem [shape: f32[1,8], index: 2, kind: input, shape index: {}]   ;;  %s659_s3 = inlined_call_operand.vmem [shape: f32[128,8], index: 3, kind: output, shape index: {}]  }
   0x1   :  { %s607_s14 = smov 0  }
   0x2 LB: > { %s25_s15 = sadd.s32 1, %s577_s13  ;;  %p480_p0 = scmp.ge.s32.totalorder %s581_s14, 1  ;;  %s581_s14 = sphi %s607_s14, %s13_s14   ;;  %s577_s13 = sphi %s605_s13, %s661_s13   ;;  %s573_s12 = sphi %s603_s12, %s660_s12  }
   0x3   : > { %p27_p1 = scmp.ge.s32.totalorder %s25_s15, 2  ;;  %p169_p2 = scmp.lt.s32.totalorder %s581_s14, 3 }
   0x5   : > { %s663_s15 = smov (%p27_p1, %s25_s15), 0  ;;  %p170_p3 = pnand %p480_p0, %p169_p2 }
   0x6   : > { %v552_v0 = vld [vmem:[%s657_s1] sm:$0xff] (!%p170_p3)   ;;  %v553_v1 = vld [vmem:[%s657_s1 + $0x8] sm:$0xff] (!%p170_p3)   ;;  %s481_s20 = sshll.u32 (!%p170_p3), %s573_s12, 3  ;;  %v554_v2 = vld [vmem:[%s657_s1 + $0x10] ss:$0 sps:$4 sm:$0x33] (!%p170_p3)  }
   0x7   : > { %173 = sbr.rel (%p170_p3) target bundleno = 237 (0xed), region = 32  ;;  %506 = vmatprep.subr.bf16.mxu0 (!%p170_p3), %v552_v0  ;;  %520 = vmatprep.subr.bf16.mxu1 (!%p170_p3), %v552_v0  ;;  %p204_p4 = scmp.lt.s32.totalorder (!%p170_p3), %s481_s20, 15  ;;  %vm294_vm0 = vcmask (!%p170_p3), 1041408   ;;  %vm281_vm1 = vcmask (!%p170_p3), 293888   ;;  %v485_v8 = vld [vmem:[%s658_s2] ss:$0 sm:$0xff] (!%p170_p3) }
   0x8   : > { %507 = vmatpush3.bf16.msra.mxu0 (!%p170_p3), %v552_v0  ;;  %523 = vmatpush3.bf16.msra.mxu1 (!%p170_p3), %v552_v0  ;;  %v296_v3 = vsel (!%p170_p3), %vm294_vm0, %v554_v2, 0  ;;  %vm363_vm2 = vcmask (!%p170_p3), 64512  }
   0x9   : > { %508 = vmatprep.subr.bf16.mxu0 (!%p170_p3), %v553_v1  ;;  %521 = vmatprep.subr.bf16.mxu1 (!%p170_p3), %v553_v1 }
   0xc   : > { %509 = vmatpush3.bf16.msra.mxu0 (!%p170_p3), %v553_v1  ;;  %524 = vmatpush3.bf16.msra.mxu1 (!%p170_p3), %v553_v1 }
   0xd   : > { %526 = vmatprep.subr.msk.bf16.mxu0 (!%p170_p3), %vm294_vm0, %v554_v2  ;;  %527 = vmatprep.subr.msk.bf16.mxu1 (!%p170_p3), %vm294_vm0, %v554_v2 }
   0xe   : > { %s665_s20 = smov (!%p204_p4, %s481_s20), 15 }
   0xf   : > { %s482_s23 = sshll.u32 %s665_s20, 2  ;;  %s484_s27 = sshll.u32 %s665_s20, 3 }
  0x10   : > { %s207_s26 = scalar_lea.vmem %s656_s0, %s482_s23  ;;  %511 = vmatpush3.bf16.msra.mxu0 %v296_v3  ;;  %525 = vmatpush3.bf16.msra.mxu1 %v296_v3  ;;  %s223_s5 = scalar_lea.vmem %s659_s3, %s484_s27 }
  0x11   : > { %v555_v4 = vld [vmem:[%s207_s26] sm:$0xff]   ;;  %v556_v5 = vld [vmem:[%s207_s26 + $0x10] sm:$0xff]   ;;  %v557_v6 = vld [vmem:[%s207_s26 + $0x8] sm:$0xff]  }
  0x12   : > { %512 = vmatprep.mubr.msk.bf16.mxu0 %vm281_vm1, %v555_v4  ;;  %v558_v7 = vld [vmem:[%s207_s26 + $0x18] sm:$0xff]   ;;  %516 = vmatprep.mubr.msk.bf16.mxu1 %vm281_vm1, %v556_v5 }
  0x13   : > { %513 = vmatmul.mubr.msk.bf16.vlgmr.msra.gmra.mrb[0].mxu0 %vm281_vm1, %v557_v6  ;;  %517 = vmatmul.mubr.msk.bf16.vlgmr.msra.gmra.mrb[0].mxu1 %vm281_vm1, %v558_v7 }
  0xe6   : > { %v514_v9 = vpop.f32.mrb[0].mxu0  ;;  %v518_v10 = vpop.f32.mrb[0].mxu1 }
  0xe7   : > { %v341_v11 = vadd.f32 %v514_v9, %v485_v8  ;;  %v357_v12 = vadd.f32 %v518_v10, %v485_v8  ;;  %v332_v13 = vpop.f32.mrb[1].mxu0  ;;  %v348_v14 = vpop.f32.mrb[1].mxu1 }
  0xe8   : > { %v333_v15 = vadd.f32 %v485_v8, %v332_v13  ;;  %v349_v16 = vadd.f32 %v485_v8, %v348_v14  ;;  %v515_v17 = vpop.f32.mrb[2].mxu0  ;;  %v519_v18 = vpop.f32.mrb[2].mxu1 }
  0xe9   : > { %366 = vst.msk [vmem:[%s223_s5 + $0x10] sm:$0xff] %vm363_vm2, %v341_v11  ;;  %370 = vst.msk [vmem:[%s223_s5 + $0x30] sm:$0xff] %vm363_vm2, %v357_v12  ;;  %v344_v19 = vadd.f32 %v515_v17, %v485_v8  ;;  %v360_v20 = vadd.f32 %v519_v18, %v485_v8  ;;  %v335_v21 = vpop.f32.mrb[3].mxu0  ;;  %v351_v22 = vpop.f32.mrb[3].mxu1 }
  0xea   : > { %364 = vst.msk [vmem:[%s223_s5] sm:$0xff] %vm363_vm2, %v333_v15  ;;  %368 = vst.msk [vmem:[%s223_s5 + $0x20] sm:$0xff] %vm363_vm2, %v349_v16  ;;  %v336_v23 = vadd.f32 %v485_v8, %v335_v21  ;;  %v352_v24 = vadd.f32 %v485_v8, %v351_v22 }
  0xeb   : > { %367 = vst.msk [vmem:[%s223_s5 + $0x18] sm:$0xff] %vm363_vm2, %v344_v19  ;;  %371 = vst.msk [vmem:[%s223_s5 + $0x38] sm:$0xff] %vm363_vm2, %v360_v20 }
  0xec   : > { %365 = vst.msk [vmem:[%s223_s5 + $0x8] sm:$0xff] %vm363_vm2, %v336_v23  ;;  %369 = vst.msk [vmem:[%s223_s5 + $0x28] sm:$0xff] %vm363_vm2, %v352_v24 }
  0xed PF: > { %s13_s14 = sadd.s32 1, %s581_s14   ;;  %s660_s12 = smov %s577_s13 }
  0xee   : > { %p10_p5 = scmp.ge.s32.totalorder %s13_s14, 4   ;;  %s661_s13 = smov %s663_s15 }
  0xf0   :  { %12 = sbr.rel (!%p10_p5) target bundleno = 2 (0x2), region = 68 }

</bundles_post_ra>
